<compile_context>
chip_gen: v7x
topology: tpu7x:2x2x1
jax: 0.10.0
libtpu: 0.0.40
codegen_flags: <defaults>
</compile_context>

<pallas_src>
import math
import jax
import jax.numpy as jnp
from jax.experimental import pallas as pl
from jax.experimental.pallas import tpu as pltpu


# ----------------------------------------------------------------------------
# Kernels
# ----------------------------------------------------------------------------

def _gcn_kernel_ax_then_w(x_ref, ah_ref, w_ref, o_ref, acc_ref):
    """ReLU((Ah @ x) @ W).  Used when in_dim <= out_dim.

    x_ref  : (b_blk, tk, in_dim)
    ah_ref : (b_blk, tm, tk)
    w_ref  : (in_dim, out_dim)          (resident; constant block index)
    o_ref  : (b_blk, tm, out_dim)
    acc_ref: (b_blk, tm, in_dim) f32    accumulator over k (Ah column) tiles
    """
    k = pl.program_id(2)

    @pl.when(k == 0)
    def _():
        acc_ref[...] = jnp.zeros_like(acc_ref)

    # Dominant contraction on the MXU, f32 accumulation.
    acc_ref[...] += jnp.einsum(
        "bmk,bkd->bmd", ah_ref[...], x_ref[...],
        preferred_element_type=jnp.float32)

    @pl.when(k == pl.num_programs(2) - 1)
    def _():
        w = w_ref[...].astype(jnp.float32)
        for b in range(o_ref.shape[0]):  # static unroll; b_blk > 1 only at tiny N
            out_b = jnp.dot(acc_ref[b], w, preferred_element_type=jnp.float32)
            o_ref[b] = jnp.maximum(out_b, 0.0).astype(o_ref.dtype)


def _gcn_kernel_w_then_a(x_ref, ah_ref, w_ref, o_ref, acc_ref):
    """ReLU(Ah @ (x @ W)).  Used when in_dim > out_dim.

    acc_ref: (b_blk, tm, out_dim) f32.
    """
    k = pl.program_id(2)

    @pl.when(k == 0)
    def _():
        acc_ref[...] = jnp.zeros_like(acc_ref)

    w = w_ref[...]
    for b in range(x_ref.shape[0]):      # static unroll; b_blk > 1 only at tiny N
        support_b = jnp.dot(x_ref[b], w, preferred_element_type=jnp.float32)
        acc_ref[b] += jnp.dot(
            ah_ref[b], support_b.astype(ah_ref.dtype),
            preferred_element_type=jnp.float32)

    @pl.when(k == pl.num_programs(2) - 1)
    def _():
        o_ref[...] = jnp.maximum(acc_ref[...], 0.0).astype(o_ref.dtype)


# ----------------------------------------------------------------------------
# Wrapper
# ----------------------------------------------------------------------------

def _pick_tile(n, max_tile=512):
    """Largest tile <= max_tile that divides n and keeps (8,128) layout legal."""
    if n <= max_tile:
        return n                      # full dim is always layout-legal
    for t in (max_tile, 384, 256, 128):
        if n % t == 0:
            return t
    return n                          # fallback: full dim (correct, VMEM-heavy)


def _pick_batch_block(B, N, itemsize, vmem_budget=2 * 1024 * 1024, max_fold=16):
    """Fold batch elements at small N to amortize per-grid-step overhead."""
    if N >= 128:
        return 1
    bb = max(1, min(B, max_fold, vmem_budget // max(1, N * N * itemsize)))
    while B % bb != 0:
        bb -= 1
    return bb


def gcn_layer(inputs, Ah, weight, *, tile_m=None, tile_k=None, batch_block=None,
              compute_dtype=None, vmem_limit_bytes=None):
    """ReLU(Ah @ inputs @ W) with f32 accumulation (matches GCNLayer.forward)."""
    B, N, in_dim = inputs.shape
    assert Ah.shape == (B, N, N), Ah.shape
    assert weight.shape[0] == in_dim, (weight.shape, in_dim)
    out_dim = weight.shape[1]
    out_dtype = inputs.dtype

    # Optional bf16 compute (v6e / v7x MXU fast path); accumulation stays f32.
    if compute_dtype is not None:
        inputs = inputs.astype(compute_dtype)
        Ah = Ah.astype(compute_dtype)
        weight = weight.astype(compute_dtype)
    itemsize = jnp.dtype(inputs.dtype).itemsize

    tm = tile_m if tile_m is not None else _pick_tile(N)
    tk = tile_k if tile_k is not None else _pick_tile(N)
    assert N % tm == 0 and N % tk == 0, (N, tm, tk)
    b_blk = batch_block if batch_block is not None else _pick_batch_block(B, N, itemsize)
    assert B % b_blk == 0, (B, b_blk)

    # Reassociate (Ah @ x) @ W when it shrinks the dominant N x N contraction.
    reassociate = in_dim <= out_dim
    kernel = _gcn_kernel_ax_then_w if reassociate else _gcn_kernel_w_then_a
    d_acc = in_dim if reassociate else out_dim

    grid = (B // b_blk, N // tm, N // tk)

    cost = pl.CostEstimate(
        flops=2 * B * N * N * min(in_dim, out_dim) + 2 * B * N * in_dim * out_dim,
        transcendentals=0,
        bytes_accessed=itemsize * (B * N * N + B * N * in_dim + in_dim * out_dim)
        + jnp.dtype(out_dtype).itemsize * B * N * out_dim,
    )

    # TODO(synk): out_dim < 128 still hits masked stores; lane-padding the
    # output in the wrapper is a possible further win for tiny out_dim.
    return pl.pallas_call(
        kernel,
        out_shape=jax.ShapeDtypeStruct((B, N, out_dim), out_dtype),
        grid_spec=pltpu.PrefetchScalarGridSpec(
            num_scalar_prefetch=0,
            grid=grid,
            in_specs=[
                pl.BlockSpec((b_blk, tk, in_dim), lambda b, i, k: (b, k, 0)),
                pl.BlockSpec((b_blk, tm, tk), lambda b, i, k: (b, i, k)),
                pl.BlockSpec((in_dim, out_dim), lambda b, i, k: (0, 0)),
            ],
            out_specs=pl.BlockSpec((b_blk, tm, out_dim), lambda b, i, k: (b, i, 0)),
            scratch_shapes=[pltpu.VMEM((b_blk, tm, d_acc), jnp.float32)],
        ),
        compiler_params=pltpu.CompilerParams(
            dimension_semantics=("parallel", "parallel", "arbitrary"),
            vmem_limit_bytes=vmem_limit_bytes,
        ),
        cost_estimate=cost,
    )(inputs, Ah, weight)


# ----------------------------------------------------------------------------
# Self-test
# ----------------------------------------------------------------------------

def _reference(inputs, Ah, weight):
    support = jnp.matmul(inputs, weight)
    return jnp.maximum(jnp.matmul(Ah, support), 0.0)


if __name__ == "__main__":
    def make_case(key, B, N, in_dim, out_dim):
        k_x, k_a, k_w = jax.random.split(key, 3)
        x = jax.random.normal(k_x, (B, N, in_dim), dtype=jnp.float32)
        Ah = jax.random.normal(k_a, (B, N, N), dtype=jnp.float32)
        stdv = 1.0 / math.sqrt(out_dim)  # mirrors nn.Parameter.uniform_(-stdv, stdv)
        w = jax.random.uniform(k_w, (in_dim, out_dim), jnp.float32, -stdv, stdv)
        return x, Ah, w

    k1, k2, k3 = jax.random.split(jax.random.PRNGKey(0), 3)

    # Case 1: module-like toy shapes (in_dim < out_dim -> reassociated kernel,
    # whole batch folded into one grid step).
    x, Ah, w = make_case(k1, B=2, N=16, in_dim=8, out_dim=32)
    out = jax.block_until_ready(gcn_layer(x, Ah, w))
    ref = _reference(x, Ah, w)
    assert out.shape == ref.shape
    assert jnp.allclose(out, ref, atol=1e-4, rtol=1e-4)

    # Case 2: in_dim > out_dim -> Ah @ (x @ W) kernel path.
    x, Ah, w = make_case(k2, B=2, N=32, in_dim=32, out_dim=8)
    out = jax.block_until_ready(gcn_layer(x, Ah, w))
    assert jnp.allclose(out, _reference(x, Ah, w), atol=1e-4, rtol=1e-4)

    # Case 3: exercise the N-tiling / k-axis accumulator path explicitly.
    x, Ah, w = make_case(k3, B=1, N=256, in_dim=8, out_dim=32)
    out = jax.block_until_ready(gcn_layer(x, Ah, w, tile_m=128, tile_k=128))
    assert jnp.allclose(out, _reference(x, Ah, w), atol=1e-4, rtol=1e-4)

    print("KERNEL_OK")
</pallas_src>

<mosaic_0001>
module attributes {stable_mosaic.version = 11 : i64} {
  func.func @_gcn_kernel_ax_then_w(%arg0: i32, %arg1: i32, %arg2: i32, %arg3: memref<2x16x8xf32, #tpu.memory_space<vmem>>, %arg4: memref<2x16x16xf32, #tpu.memory_space<vmem>>, %arg5: memref<8x32xf32, #tpu.memory_space<vmem>>, %arg6: memref<2x16x32xf32, #tpu.memory_space<vmem>>, %arg7: memref<2x16x8xf32, #tpu.memory_space<vmem>>) attributes {dimension_semantics = [#tpu.dimension_semantics<parallel>, #tpu.dimension_semantics<parallel>, #tpu.dimension_semantics<arbitrary>], iteration_bounds = array<i64: 1, 1, 1>, scalar_prefetch = 0 : i64, scratch_operands = 1 : i64, tpu.core_type = #tpu.core_type<tc>, window_params = [{transform_indices = @transform_0, window_bounds = array<i64: 2, 16, 8>}, {transform_indices = @transform_1, window_bounds = array<i64: 2, 16, 16>}, {pipeline_mode = #tpu.pipeline_mode<synchronous>, transform_indices = @transform_2, window_bounds = array<i64: 8, 32>}, {transform_indices = @transform_3, window_bounds = array<i64: 2, 16, 32>}]} {
    %c0_i32 = arith.constant 0 : i32
    %0 = arith.cmpi eq, %arg2, %c0_i32 : i32
    %1 = arith.extui %0 : i1 to i32
    %c0_i32_0 = arith.constant 0 : i32
    %2 = arith.cmpi ne, %1, %c0_i32_0 : i32
    scf.if %2 {
      %cst_14 = arith.constant 0.000000e+00 : f32
      %12 = vector.broadcast %cst_14 : f32 to vector<2x16x8xf32>
      %c0_15 = arith.constant 0 : index
      %c0_16 = arith.constant 0 : index
      %c0_17 = arith.constant 0 : index
      %13 = vector.load %arg7[%c0_15, %c0_16, %c0_17] : memref<2x16x8xf32, #tpu.memory_space<vmem>>, vector<2x16x8xf32>
      tpu.vector_store %arg7[%c0_15, %c0_16, %c0_17], %12 {strides = array<i32>} : memref<2x16x8xf32, #tpu.memory_space<vmem>>, vector<2x16x8xf32>,
    } else {
    }
    %c0 = arith.constant 0 : index
    %c0_1 = arith.constant 0 : index
    %c0_2 = arith.constant 0 : index
    %3 = vector.load %arg7[%c0, %c0_1, %c0_2] : memref<2x16x8xf32, #tpu.memory_space<vmem>>, vector<2x16x8xf32>
    %c0_3 = arith.constant 0 : index
    %c0_4 = arith.constant 0 : index
    %c0_5 = arith.constant 0 : index
    %4 = vector.load %arg4[%c0_3, %c0_4, %c0_5] : memref<2x16x16xf32, #tpu.memory_space<vmem>>, vector<2x16x16xf32>
    %c0_6 = arith.constant 0 : index
    %c0_7 = arith.constant 0 : index
    %c0_8 = arith.constant 0 : index
    %5 = vector.load %arg3[%c0_6, %c0_7, %c0_8] : memref<2x16x8xf32, #tpu.memory_space<vmem>>, vector<2x16x8xf32>
    "tpu.trace_start"() <{level = 10 : i32, message = "bmk,bkd->bmd"}> : () -> ()
    %cst = arith.constant dense<0.000000e+00> : vector<2x16x8xf32>
    %6 = tpu.matmul %4, %5, %cst {dimension_numbers = #tpu.dot_dimension_numbers<[2], [1], [1], [2], [0, 0, 0, 1, 1, 2], [0], [0]>} : vector<2x16x16xf32>, vector<2x16x8xf32>, vector<2x16x8xf32> -> vector<2x16x8xf32>
    "tpu.trace_stop"() : () -> ()
    %7 = arith.addf %3, %6 : vector<2x16x8xf32>
    %c0_9 = arith.constant 0 : index
    %c0_10 = arith.constant 0 : index
    %c0_11 = arith.constant 0 : index
    %8 = vector.load %arg7[%c0_9, %c0_10, %c0_11] : memref<2x16x8xf32, #tpu.memory_space<vmem>>, vector<2x16x8xf32>
    tpu.vector_store %arg7[%c0_9, %c0_10, %c0_11], %7 {strides = array<i32>} : memref<2x16x8xf32, #tpu.memory_space<vmem>>, vector<2x16x8xf32>,
    %c0_i32_12 = arith.constant 0 : i32
    %9 = arith.cmpi eq, %arg2, %c0_i32_12 : i32
    %10 = arith.extui %9 : i1 to i32
    %c0_i32_13 = arith.constant 0 : i32
    %11 = arith.cmpi ne, %10, %c0_i32_13 : i32
    scf.if %11 {
      %c0_14 = arith.constant 0 : index
      %c0_15 = arith.constant 0 : index
      %12 = vector.load %arg5[%c0_14, %c0_15] : memref<8x32xf32, #tpu.memory_space<vmem>>, vector<8x32xf32>
      %c0_16 = arith.constant 0 : index
      %c0_17 = arith.constant 0 : index
      %c0_18 = arith.constant 0 : index
      %13 = vector.load %arg7[%c0_16, %c0_17, %c0_18] : memref<2x16x8xf32, #tpu.memory_space<vmem>>, vector<1x16x8xf32>
      %14 = vector.shape_cast %13 : vector<1x16x8xf32> to vector<16x8xf32>
      %cst_19 = arith.constant dense<0.000000e+00> : vector<16x32xf32>
      %15 = tpu.matmul %14, %12, %cst_19 {dimension_numbers = #tpu.dot_dimension_numbers<[1], [0], [0], [1], [0, 0, 1, 1], [], []>} : vector<16x8xf32>, vector<8x32xf32>, vector<16x32xf32> -> vector<16x32xf32>
      %cst_20 = arith.constant 0.000000e+00 : f32
      %16 = vector.broadcast %cst_20 : f32 to vector<16x32xf32>
      %17 = arith.maximumf %15, %16 : vector<16x32xf32>
      %c0_21 = arith.constant 0 : index
      %c0_22 = arith.constant 0 : index
      %c0_23 = arith.constant 0 : index
      %18 = vector.load %arg6[%c0_21, %c0_22, %c0_23] : memref<2x16x32xf32, #tpu.memory_space<vmem>>, vector<1x16x32xf32>
      %19 = vector.shape_cast %18 : vector<1x16x32xf32> to vector<16x32xf32>
      %20 = vector.shape_cast %17 : vector<16x32xf32> to vector<1x16x32xf32>
      tpu.vector_store %arg6[%c0_21, %c0_22, %c0_23], %20 {strides = array<i32>} : memref<2x16x32xf32, #tpu.memory_space<vmem>>, vector<1x16x32xf32>,
      %c1 = arith.constant 1 : index
      %c0_24 = arith.constant 0 : index
      %c0_25 = arith.constant 0 : index
      %21 = vector.load %arg7[%c1, %c0_24, %c0_25] : memref<2x16x8xf32, #tpu.memory_space<vmem>>, vector<1x16x8xf32>
      %22 = vector.shape_cast %21 : vector<1x16x8xf32> to vector<16x8xf32>
      %cst_26 = arith.constant dense<0.000000e+00> : vector<16x32xf32>
      %23 = tpu.matmul %22, %12, %cst_26 {dimension_numbers = #tpu.dot_dimension_numbers<[1], [0], [0], [1], [0, 0, 1, 1], [], []>} : vector<16x8xf32>, vector<8x32xf32>, vector<16x32xf32> -> vector<16x32xf32>
      %cst_27 = arith.constant 0.000000e+00 : f32
      %24 = vector.broadcast %cst_27 : f32 to vector<16x32xf32>
      %25 = arith.maximumf %23, %24 : vector<16x32xf32>
      %c1_28 = arith.constant 1 : index
      %c0_29 = arith.constant 0 : index
      %c0_30 = arith.constant 0 : index
      %26 = vector.load %arg6[%c1_28, %c0_29, %c0_30] : memref<2x16x32xf32, #tpu.memory_space<vmem>>, vector<1x16x32xf32>
      %27 = vector.shape_cast %26 : vector<1x16x32xf32> to vector<16x32xf32>
      %28 = vector.shape_cast %25 : vector<16x32xf32> to vector<1x16x32xf32>
      tpu.vector_store %arg6[%c1_28, %c0_29, %c0_30], %28 {strides = array<i32>} : memref<2x16x32xf32, #tpu.memory_space<vmem>>, vector<1x16x32xf32>,
    } else {
    }
    return
  }
  func.func @transform_0(%arg0: i32, %arg1: i32, %arg2: i32) -> (i32, i32, i32) {
    %c0_i32 = arith.constant 0 : i32
    %c0_i32_0 = arith.constant 0 : i32
    return %arg0, %arg2, %c0_i32 : i32, i32, i32
  }
  func.func @transform_1(%arg0: i32, %arg1: i32, %arg2: i32) -> (i32, i32, i32) {
    %c0_i32 = arith.constant 0 : i32
    return %arg0, %arg1, %arg2 : i32, i32, i32
  }
  func.func @transform_2(%arg0: i32, %arg1: i32, %arg2: i32) -> (i32, i32) {
    %c0_i32 = arith.constant 0 : i32
    %c0_i32_0 = arith.constant 0 : i32
    %c0_i32_1 = arith.constant 0 : i32
    return %c0_i32, %c0_i32_0 : i32, i32
  }
  func.func @transform_3(%arg0: i32, %arg1: i32, %arg2: i32) -> (i32, i32, i32) {
    %c0_i32 = arith.constant 0 : i32
    %c0_i32_0 = arith.constant 0 : i32
    return %arg0, %arg1, %c0_i32 : i32, i32, i32
  }
}

</mosaic_0001>

<bundles_post_ra>
// kernel: tpu_custom_call.1
= control target key start
LH: loop header
LB: loop body
LE: loop exit
PB: predicated region body
PF: predicated region fallthrough
CT: control target
= control target key end

     0   :  { %vm36_vm0 = vcmask 130048   ;;  %vm19_vm1 = vcmask 64512   ;;  %v487_v7 = vmov 0.0   ;;  %s566_s0 = inlined_call_operand.vmem [shape: f32[2,16,8], index: 0, kind: input, shape index: {}]   ;;  %s567_s1 = inlined_call_operand.vmem [shape: f32[2,16,16], index: 1, kind: input, shape index: {}]   ;;  %s568_s2 = inlined_call_operand.vmem [shape: f32[8,32], index: 2, kind: input, shape index: {}]   ;;  %s569_s3 = inlined_call_operand.hbm [shape: f32[2,16,32], index: 3, kind: output, shape index: {}]  }
   0x1   :  { %v32_v0 = vld [vmem:[%s566_s0] sm:$0xff]  ;;  %v33_v1 = vld [vmem:[%s566_s0 + $0x8] sm:$0xff]  ;;  %v34_v2 = vld [vmem:[%s566_s0 + $0x10] sm:$0xff]  ;;  %21 = vst.msk [vmem:[#allocation2 + $0x8] sm:$0xff] %vm19_vm1, %v487_v7 }
   0x2   :  { %v451_v3 = vpack.c.bf16 %v33_v1, %v32_v0  ;;  %v35_v4 = vld [vmem:[%s566_s0 + $0x18] sm:$0xff]  ;;  %v28_v5 = vld [vmem:[%s567_s1] sm:$0xff]  ;;  %v30_v6 = vld [vmem:[%s567_s1 + $0x10] sm:$0xff]  ;;  %20 = vst.msk [vmem:[#allocation2] sm:$0xff] %vm19_vm1, %v487_v7 }
   0x3   :  { %22 = vst.msk [vmem:[#allocation2 + $0x10] sm:$0xff] %vm19_vm1, %v487_v7  ;;  %23 = vst.msk [vmem:[#allocation2 + $0x18] sm:$0xff] %vm19_vm1, %v487_v7  ;;  %v455_v8 = vpack.c.bf16 %v35_v4, %v34_v2  ;;  %431 = vmatprep.mubr.msk.f32.mxu0 %vm36_vm0, %v28_v5  ;;  %438 = vmatprep.mubr.msk.f32.mxu1 %vm36_vm0, %v30_v6 }
   0x4   :  { %8 = vsyncpa [#allocation4], 0  ;;  %452 = vmatprep.subr.bf16.mxu0 %v451_v3  ;;  %v29_v9 = vld [vmem:[%s567_s1 + $0x8] sm:$0xff]  ;;  %v31_v10 = vld [vmem:[%s567_s1 + $0x18] sm:$0xff]  ;;  %s488_s1 = smov [#allocation3]   ;;  %vm297_vm2 = vcmask 261120  }
   0x5   :  { %456 = vmatprep.subr.bf16.mxu1 %v455_v8  ;;  %454 = vmatpush3.bf16.msra.mxu0 %v451_v3  ;;  %v211_v11 = vld [vmem:[%s568_s2] sm:$0xff]  ;;  %s394_s2 = sshll.u32 %s488_s1, 4  ;;  %s395_s2 = int_to_ptr.vmem [resolvable:$true] %s394_s2 }
   0x6   :  { %458 = vmatpush3.bf16.msra.mxu1 %v455_v8  ;;  %441 = vmatprep.subr.mxu0 %v211_v11  ;;  %s463_s29 = scalar_lea.vmem %s395_s2, 512  ;;  %p468_p1 = scmp.lt.s32.totalorder %s395_s2, %s395_s2 }
   0x7   :  { %446 = vmatprep.subr.mxu1 %v211_v11  ;;  %p464_p0 = scmp.ne.s32.totalorder %s395_s2, %s463_s29  ;;  %p469_p2 = scmp.lt.s32.totalorder %s463_s29, %s463_s29 }
   0x8   :  { %432 = vmatmul.mubr.msk.f32.vlgmr.msra.gmra.mrb[0].mxu0 %vm36_vm0, %v29_v9  ;;  %v25_v12 = vld [vmem:[#allocation2 + $0x8] sm:$0xff] }
   0x9   :  { %439 = vmatmul.mubr.msk.f32.vlgmr.msra.gmra.mrb[0].mxu1 %vm36_vm0, %v31_v10  ;;  %442 = vmatpush3.msra.mxu0 %v211_v11  ;;  %v24_v14 = vld [vmem:[#allocation2] sm:$0xff]  ;;  %p470_p3 = por %p469_p2, %p468_p1 }
   0xa   :  { %447 = vmatpush3.msra.mxu1 %v211_v11  ;;  %v27_v13 = vld [vmem:[#allocation2 + $0x18] sm:$0xff]  ;;  %v26_v16 = vld [vmem:[#allocation2 + $0x10] sm:$0xff] }
   0xb   :  { %p471_p4 = pnand %p470_p3, %p464_p0 }
  0xdb   :  { %v433_v15 = vpop.f32.mrb[0].mxu0 }
  0xdc   :  { %v200_v17 = vadd.f32 %v433_v15, %v25_v12  ;;  %v440_v18 = vpop.f32.mrb[0].mxu1  ;;  %v109_v19 = vpop.f32.mrb[1].mxu0 }
  0xdd   :  { %v202_v20 = vadd.f32 %v440_v18, %v27_v13  ;;  %v199_v21 = vadd.f32 %v109_v19, %v24_v14  ;;  %v190_v22 = vpop.f32.mrb[1].mxu1 }
  0xde   :  { %205 = vst.msk [vmem:[#allocation2 + $0x8] sm:$0xff] %vm19_vm1, %v200_v17  ;;  %v201_v23 = vadd.f32 %v190_v22, %v26_v16 }
  0xdf   :  { %207 = vst.msk [vmem:[#allocation2 + $0x18] sm:$0xff] %vm19_vm1, %v202_v20  ;;  %204 = vst.msk [vmem:[#allocation2] sm:$0xff] %vm19_vm1, %v199_v21 }
  0xe0   :  { %206 = vst.msk [vmem:[#allocation2 + $0x10] sm:$0xff] %vm19_vm1, %v201_v23 }
  0xe5   :  { %v213_v26 = vld [vmem:[#allocation2 + $0x8] sm:$0xff] }
  0xe6   :  { %v212_v24 = vld [vmem:[#allocation2] sm:$0xff]  ;;  %v302_v27 = vld [vmem:[#allocation2 + $0x18] sm:$0xff] }
  0xe7   :  { %443 = vmatprep.mubr.msk.f32.mxu0 %vm19_vm1, %v212_v24  ;;  %v301_v25 = vld [vmem:[#allocation2 + $0x10] sm:$0xff] }
  0xe8   :  { %448 = vmatprep.mubr.msk.f32.mxu1 %vm19_vm1, %v301_v25  ;;  %444 = vmatmul.mubr.msk.f32.vlgmr.msra.gmra.mrb[2].mxu0 %vm19_vm1, %v213_v26 }
  0xe9   :  { %449 = vmatmul.mubr.msk.f32.vlgmr.msra.gmra.mrb[2].mxu1 %vm19_vm1, %v302_v27 }
 0x1bb   :  { %v445_v28 = vpop.f32.mrb[2].mxu0 }
 0x1bc   :  { %v296_v29 = vmax.f32 %v445_v28, 0.0  ;;  %v450_v30 = vpop.f32.mrb[2].mxu1  ;;  %v286_v31 = vpop.f32.mrb[3].mxu0 }
 0x1bd   :  { %v385_v32 = vmax.f32 %v450_v30, 0.0  ;;  %v295_v33 = vmax.f32 %v286_v31, 0.0  ;;  %v375_v34 = vpop.f32.mrb[3].mxu1 }
 0x1be   :  { %299 = vst.msk [vmem:[#allocation3 + $0x8] sm:$0xff] %vm297_vm2, %v296_v29  ;;  %v384_v35 = vmax.f32 %v375_v34, 0.0 }
 0x1bf   :  { %388 = vst.msk [vmem:[#allocation3 + $0x18] sm:$0xff] %vm297_vm2, %v385_v32  ;;  %298 = vst.msk [vmem:[#allocation3] sm:$0xff] %vm297_vm2, %v295_v33 }
 0x1c0   :  { %387 = vst.msk [vmem:[#allocation3 + $0x10] sm:$0xff] %vm297_vm2, %v384_v35 }
 0x1c1   :  { %474 = shalt.err (!%p471_p4)
}
 0x1c2   :  { %s475_s5 = scalar_lea.hbm %s569_s3, 512 }
 0x1c3   :  { %p476_p5 = scmp.ne.s32.totalorder %s569_s3, %s475_s5  ;;  %p479_p6 = scmp.lt.u32.totalorder %s475_s5, %s569_s3 }
 0x1c5   :  { %p481_p7 = pnand %p479_p6, %p476_p5 }
 0x1c7   :  { %484 = shalt.err (!%p481_p7)
}
 0x1c8   :  { %s489_s10 = smov 128   ;;  %s490_s11 = smov 8  }
 0x1c9   :  { %400 = dma.vmem_to_hbm [thread:$0]  %s395_s2, 512, %s569_s3, [#allocation4], %s489_s10, %s489_s10, %s490_s11  }
 0x1ca   :  { %485 = dma.done.wait [#allocation4], 512  }
 0x1cb   :  { %486 = vsyncadd [#allocation4], 4294966784 }
 0x1cc   :  { %404 = vsyncpa [#allocation4], 1 }

</bundles_post_ra>
